<compile_context>
chip_gen: v7x
topology: tpu7x:2x2x1
jax: 0.10.0
libtpu: 0.0.40
codegen_flags: <defaults>
</compile_context>

<pallas_src>
import math

import jax
import jax.numpy as jnp
from jax.experimental import pallas as pl
from jax.experimental.pallas import tpu as pltpu


def _contact_head_kernel(attn_ref, krow_ref, kcol_ref, w_ref, b_ref, o_ref, acc_ref):
    cb = pl.program_id(1)

    @pl.when(cb == 0)
    def _():
        acc_ref[...] = jnp.zeros_like(acc_ref)

    # Pair mask (T, T) rebuilt from the row/col keep vectors (costs 1/c_tile op
    # per attention element): zeroes eos tokens AND the bos/eos border rows+cols.
    pair = kcol_ref[...] * krow_ref[...]                       # (T,1)*(1,T) -> (T,T)

    a = attn_ref[...].astype(jnp.float32) * pair[None, :, :]   # (c_tile, T, T) masked
    w = w_ref[...].astype(jnp.float32)                         # (c_tile, 1)

    # Row / col sums of the symmetrized per-channel map collapse onto a single
    # vector s (sym is symmetric); its total is the APC denominator.
    r = jnp.sum(a, axis=-1)                                    # (c_tile, T)
    q = jnp.sum(a, axis=-2)                                    # (c_tile, T)
    s = r + q                                                  # (c_tile, T)
    tot = jnp.sum(s, axis=-1, keepdims=True)                   # (c_tile, 1)
    u = s * (w * 0.5 / tot)                                    # (c_tile, T)

    # Accumulate  sum_c w_c * a_c  -  0.5 * sum_c (w_c/tot_c) * s_c s_c^T.
    # The APC term is symmetric, so the final  acc + acc^T  reconstructs the
    # reference  sum_c w_c * (sym_c - APC_c)  exactly, with one (T,T)
    # transpose per batch instead of one per channel.
    acc_ref[...] += (
        jnp.sum(a * w[:, :, None], axis=0)
        - jnp.dot(u.T, s, preferred_element_type=jnp.float32)
    )

    @pl.when(cb == pl.num_programs(1) - 1)
    def _():
        acc = acc_ref[...]
        o_ref[...] = (acc + acc.T + b_ref[...].astype(jnp.float32)).astype(o_ref.dtype)


def _pick_c_tile(C, T, budget_bytes=4 * 1024 * 1024):
    """Largest divisor of C whose raw (c_tile, T, T) f32 block fits a VMEM budget
    (double buffering handled by keeping the budget conservative)."""
    d_max = max(1, budget_bytes // max(1, T * T * 4))
    d_max = min(C, d_max)
    for d in range(d_max, 0, -1):
        if C % d == 0:
            return d
    return 1


def contact_prediction_head(tokens, attentions, params, *, eos_idx=2, c_tile=None):
    """tokens: (B, T) int; attentions: (B, L, H, T, T) -> contacts (B, T-2, T-2)."""
    B, L, H, T, _ = attentions.shape
    C = L * H
    S = T - 2
    assert params["w"].shape == (1, C), "kernel implements the out_features=1 contact case"
    # TODO(synk): general out_features > 1 regression (the contact head uses 1;
    # squeeze(3) in the reference only fires for out_features == 1 anyway).

    # Interior keep vector: eos mask AND drop the bos / final positions.
    # Zeroing those rows/cols before APC is exactly equivalent to the reference
    # slice-then-APC (zero rows/cols contribute nothing to any APC sum), so the
    # kernel can stream the raw attention tensor with no pre-slicing HBM copy.
    pos = jnp.arange(T)
    keep = (tokens != eos_idx) & (pos[None, :] > 0) & (pos[None, :] < T - 1)
    keep = keep.astype(jnp.float32)
    keep_row = keep[:, None, :]                                # (B, 1, T)
    keep_col = keep[:, :, None]                                # (B, T, 1)

    attn_c = attentions.reshape(B, C, T, T)                    # contiguous merge, no copy

    if c_tile is None:
        c_tile = _pick_c_tile(C, T)
    assert C % c_tile == 0, "channel count must be divisible by the channel tile"
    n_cb = C // c_tile

    # Regression weight (1, C) -> (n_cb, c_tile, 1): pre-laid-out per channel
    # block (block shape == full trailing dims, no in-kernel reshuffle).
    w_blocks = params["w"].reshape(n_cb, c_tile, 1).astype(jnp.float32)
    b_2d = params["b"].reshape(1, 1).astype(jnp.float32)

    out_full = pl.pallas_call(
        _contact_head_kernel,
        out_shape=jax.ShapeDtypeStruct((B, T, T), attentions.dtype),
        grid_spec=pltpu.PrefetchScalarGridSpec(
            num_scalar_prefetch=0,
            grid=(B, n_cb),
            in_specs=[
                # attention channel block for this (batch, channel-block)
                pl.BlockSpec((None, c_tile, T, T), lambda b, c: (b, c, 0, 0)),
                # keep-vector broadcast along rows / cols (constant across c)
                pl.BlockSpec((None, 1, T), lambda b, c: (b, 0, 0)),
                pl.BlockSpec((None, T, 1), lambda b, c: (b, 0, 0)),
                # per-block regression weight slice
                pl.BlockSpec((None, c_tile, 1), lambda b, c: (c, 0, 0)),
                # regression bias
                pl.BlockSpec((1, 1), lambda b, c: (0, 0)),
            ],
            # (T, T) contact map stays resident across the channel reduction
            out_specs=pl.BlockSpec((None, T, T), lambda b, c: (b, 0, 0)),
            scratch_shapes=[pltpu.VMEM((T, T), jnp.float32)],
        ),
        compiler_params=pltpu.CompilerParams(
            dimension_semantics=("parallel", "arbitrary")),
    )(attn_c, keep_row, keep_col, w_blocks, b_2d)

    # Drop bos/eos border rows+cols (tiny copy, B*S*S elements).
    return out_full[:, 1:-1, 1:-1]


def init_params(key, in_features, dtype=jnp.float32):
    """Deterministic synthetic parameters matching nn.Linear(in_features, 1, bias=True)."""
    k1, k2 = jax.random.split(key)
    s = 1.0 / math.sqrt(in_features)
    return {
        "w": jax.random.uniform(k1, (1, in_features), dtype, -s, s),
        "b": jax.random.uniform(k2, (1,), dtype, -s, s),
    }


def _reference(tokens, attentions, params, eos_idx):
    """Pure-JAX mirror of the PyTorch forward (original op order) for a sanity check."""
    eos = (tokens != eos_idx).astype(attentions.dtype)
    pair = eos[:, None, :] * eos[:, :, None]
    att = attentions * pair[:, None, None, :, :]
    att = att[..., :-1, :-1][..., 1:, 1:]
    B, L, H, S, _ = att.shape
    att = att.reshape(B, L * H, S, S)
    sym = att + jnp.swapaxes(att, -1, -2)
    a1 = jnp.sum(sym, axis=-1, keepdims=True)
    a2 = jnp.sum(sym, axis=-2, keepdims=True)
    a12 = jnp.sum(sym, axis=(-1, -2), keepdims=True)
    apc = sym - a1 * a2 / a12
    x = jnp.transpose(apc, (0, 2, 3, 1))               # (B, S, S, C)
    return jnp.sum(x * params["w"][0], axis=-1) + params["b"][0]


if __name__ == "__main__":
    key = jax.random.PRNGKey(0)
    batch, layers, heads, seqtok = 2, 2, 8, 18   # C = 16 channels, T = 18, S = 16
    eos_idx = 2

    kt, ka, kp = jax.random.split(key, 3)
    tokens = jax.random.randint(kt, (batch, seqtok), 4, 20, dtype=jnp.int32)
    tokens = tokens.at[:, 0].set(0)             # bos/cls
    tokens = tokens.at[:, -1].set(eos_idx)      # eos
    tokens = tokens.at[1, -4].set(eos_idx)      # make batch 1's mask different

    attentions = jax.random.uniform(
        ka, (batch, layers, heads, seqtok, seqtok), jnp.float32)
    params = init_params(kp, layers * heads)

    y = contact_prediction_head(tokens, attentions, params,
                                eos_idx=eos_idx, c_tile=8)
    y = jax.block_until_ready(y)

    y_ref = _reference(tokens, attentions, params, eos_idx)
    assert y.shape == (batch, seqtok - 2, seqtok - 2)
    assert jnp.allclose(y, y_ref, atol=3e-5, rtol=1e-4), "mismatch vs reference"

    print("KERNEL_OK")
</pallas_src>

<mosaic_0001>
module attributes {stable_mosaic.version = 11 : i64} {
  func.func @_contact_head_kernel(%arg0: i32, %arg1: i32, %arg2: memref<1x8x18x18xf32, #tpu.memory_space<vmem>>, %arg3: memref<1x1x18xf32, #tpu.memory_space<vmem>>, %arg4: memref<1x18x1xf32, #tpu.memory_space<vmem>>, %arg5: memref<1x8x1xf32, #tpu.memory_space<vmem>>, %arg6: memref<1x1xf32, #tpu.memory_space<vmem>>, %arg7: memref<1x18x18xf32, #tpu.memory_space<vmem>>, %arg8: memref<18x18xf32, #tpu.memory_space<vmem>>) attributes {dimension_semantics = [#tpu.dimension_semantics<parallel>, #tpu.dimension_semantics<arbitrary>], iteration_bounds = array<i64: 2, 2>, scalar_prefetch = 0 : i64, scratch_operands = 1 : i64, tpu.core_type = #tpu.core_type<tc>, window_params = [{transform_indices = @transform_0, window_bounds = array<i64: 1, 8, 18, 18>}, {transform_indices = @transform_1, window_bounds = array<i64: 1, 1, 18>}, {transform_indices = @transform_2, window_bounds = array<i64: 1, 18, 1>}, {transform_indices = @transform_3, window_bounds = array<i64: 1, 8, 1>}, {pipeline_mode = #tpu.pipeline_mode<synchronous>, transform_indices = @transform_4, window_bounds = array<i64: 1, 1>}, {transform_indices = @transform_5, window_bounds = array<i64: 1, 18, 18>}]} {
    %c0_i32 = arith.constant 0 : i32
    %0 = arith.cmpi eq, %arg1, %c0_i32 : i32
    %1 = arith.extui %0 : i1 to i32
    %c0_i32_0 = arith.constant 0 : i32
    %2 = arith.cmpi ne, %1, %c0_i32_0 : i32
    scf.if %2 {
      %cst_23 = arith.constant 0.000000e+00 : f32
      %40 = vector.broadcast %cst_23 : f32 to vector<18x18xf32>
      %c0_24 = arith.constant 0 : index
      %c0_25 = arith.constant 0 : index
      %41 = vector.load %arg8[%c0_24, %c0_25] : memref<18x18xf32, #tpu.memory_space<vmem>>, vector<18x18xf32>
      tpu.vector_store %arg8[%c0_24, %c0_25], %40 {strides = array<i32>} : memref<18x18xf32, #tpu.memory_space<vmem>>, vector<18x18xf32>,
    } else {
    }
    %c0 = arith.constant 0 : index
    %c0_1 = arith.constant 0 : index
    %c0_2 = arith.constant 0 : index
    %3 = vector.load %arg4[%c0, %c0_1, %c0_2] : memref<1x18x1xf32, #tpu.memory_space<vmem>>, vector<1x18x1xf32>
    %4 = vector.shape_cast %3 : vector<1x18x1xf32> to vector<18x1xf32>
    %c0_3 = arith.constant 0 : index
    %c0_4 = arith.constant 0 : index
    %c0_5 = arith.constant 0 : index
    %5 = vector.load %arg3[%c0_3, %c0_4, %c0_5] : memref<1x1x18xf32, #tpu.memory_space<vmem>>, vector<1x1x18xf32>
    %6 = vector.shape_cast %5 : vector<1x1x18xf32> to vector<1x18xf32>
    %7 = vector.broadcast %4 : vector<18x1xf32> to vector<18x18xf32>
    %8 = vector.broadcast %6 : vector<1x18xf32> to vector<18x18xf32>
    %9 = arith.mulf %7, %8 : vector<18x18xf32>
    %c0_6 = arith.constant 0 : index
    %c0_7 = arith.constant 0 : index
    %c0_8 = arith.constant 0 : index
    %c0_9 = arith.constant 0 : index
    %10 = vector.load %arg2[%c0_6, %c0_7, %c0_8, %c0_9] : memref<1x8x18x18xf32, #tpu.memory_space<vmem>>, vector<1x8x18x18xf32>
    %11 = vector.shape_cast %10 : vector<1x8x18x18xf32> to vector<8x18x18xf32>
    %12 = vector.shape_cast %9 : vector<18x18xf32> to vector<1x18x18xf32>
    %13 = vector.broadcast %12 : vector<1x18x18xf32> to vector<8x18x18xf32>
    %14 = arith.mulf %11, %13 : vector<8x18x18xf32>
    %c0_10 = arith.constant 0 : index
    %c0_11 = arith.constant 0 : index
    %c0_12 = arith.constant 0 : index
    %15 = vector.load %arg5[%c0_10, %c0_11, %c0_12] : memref<1x8x1xf32, #tpu.memory_space<vmem>>, vector<1x8x1xf32>
    %16 = vector.shape_cast %15 : vector<1x8x1xf32> to vector<8x1xf32>
    %cst = arith.constant dense<0.000000e+00> : vector<8x18xf32>
    %17 = vector.multi_reduction <add>, %14, %cst [2] : vector<8x18x18xf32> to vector<8x18xf32>
    %cst_13 = arith.constant dense<0.000000e+00> : vector<8x18xf32>
    %18 = vector.multi_reduction <add>, %14, %cst_13 [1] : vector<8x18x18xf32> to vector<8x18xf32>
    %19 = arith.addf %17, %18 : vector<8x18xf32>
    %cst_14 = arith.constant dense<0.000000e+00> : vector<8xf32>
    %20 = vector.multi_reduction <add>, %19, %cst_14 [1] : vector<8x18xf32> to vector<8xf32>
    %21 = vector.shape_cast %20 : vector<8xf32> to vector<8x1xf32>
    %cst_15 = arith.constant 5.000000e-01 : f32
    %22 = vector.broadcast %cst_15 : f32 to vector<8x1xf32>
    %23 = arith.mulf %16, %22 : vector<8x1xf32>
    %24 = arith.divf %23, %21 : vector<8x1xf32>
    %25 = vector.broadcast %24 : vector<8x1xf32> to vector<8x18xf32>
    %26 = arith.mulf %19, %25 : vector<8x18xf32>
    %c0_16 = arith.constant 0 : index
    %c0_17 = arith.constant 0 : index
    %27 = vector.load %arg8[%c0_16, %c0_17] : memref<18x18xf32, #tpu.memory_space<vmem>>, vector<18x18xf32>
    %28 = vector.shape_cast %16 : vector<8x1xf32> to vector<8x1x1xf32>
    %29 = vector.broadcast %28 : vector<8x1x1xf32> to vector<8x18x18xf32>
    %30 = arith.mulf %14, %29 : vector<8x18x18xf32>
    %cst_18 = arith.constant dense<0.000000e+00> : vector<18x18xf32>
    %31 = vector.multi_reduction <add>, %30, %cst_18 [0] : vector<8x18x18xf32> to vector<18x18xf32>
    %32 = tpu.transpose %26, [1, 0] : vector<8x18xf32> -> vector<18x8xf32>
    %cst_19 = arith.constant dense<0.000000e+00> : vector<18x18xf32>
    %33 = tpu.matmul %32, %19, %cst_19 {dimension_numbers = #tpu.dot_dimension_numbers<[1], [0], [0], [1], [0, 0, 1, 1], [], []>} : vector<18x8xf32>, vector<8x18xf32>, vector<18x18xf32> -> vector<18x18xf32>
    %34 = arith.subf %31, %33 : vector<18x18xf32>
    %35 = arith.addf %27, %34 : vector<18x18xf32>
    %c0_20 = arith.constant 0 : index
    %c0_21 = arith.constant 0 : index
    %36 = vector.load %arg8[%c0_20, %c0_21] : memref<18x18xf32, #tpu.memory_space<vmem>>, vector<18x18xf32>
    tpu.vector_store %arg8[%c0_20, %c0_21], %35 {strides = array<i32>} : memref<18x18xf32, #tpu.memory_space<vmem>>, vector<18x18xf32>,
    %c1_i32 = arith.constant 1 : i32
    %37 = arith.cmpi eq, %arg1, %c1_i32 : i32
    %38 = arith.extui %37 : i1 to i32
    %c0_i32_22 = arith.constant 0 : i32
    %39 = arith.cmpi ne, %38, %c0_i32_22 : i32
    scf.if %39 {
      %c0_23 = arith.constant 0 : index
      %c0_24 = arith.constant 0 : index
      %40 = vector.load %arg8[%c0_23, %c0_24] : memref<18x18xf32, #tpu.memory_space<vmem>>, vector<18x18xf32>
      %41 = tpu.transpose %40, [1, 0] : vector<18x18xf32> -> vector<18x18xf32>
      %42 = arith.addf %40, %41 : vector<18x18xf32>
      %c0_25 = arith.constant 0 : index
      %c0_26 = arith.constant 0 : index
      %43 = vector.load %arg6[%c0_25, %c0_26] : memref<1x1xf32, #tpu.memory_space<vmem>>, vector<1x1xf32>
      %44 = vector.broadcast %43 : vector<1x1xf32> to vector<18x18xf32>
      %45 = arith.addf %42, %44 : vector<18x18xf32>
      %c0_27 = arith.constant 0 : index
      %c0_28 = arith.constant 0 : index
      %c0_29 = arith.constant 0 : index
      %46 = vector.load %arg7[%c0_27, %c0_28, %c0_29] : memref<1x18x18xf32, #tpu.memory_space<vmem>>, vector<1x18x18xf32>
      %47 = vector.shape_cast %46 : vector<1x18x18xf32> to vector<18x18xf32>
      %48 = vector.shape_cast %45 : vector<18x18xf32> to vector<1x18x18xf32>
      tpu.vector_store %arg7[%c0_27, %c0_28, %c0_29], %48 {strides = array<i32>} : memref<1x18x18xf32, #tpu.memory_space<vmem>>, vector<1x18x18xf32>,
    } else {
    }
    return
  }
  func.func @transform_0(%arg0: i32, %arg1: i32) -> (i32, i32, i32, i32) {
    %c0_i32 = arith.constant 0 : i32
    %c0_i32_0 = arith.constant 0 : i32
    %c0_i32_1 = arith.constant 0 : i32
    return %arg0, %arg1, %c0_i32, %c0_i32_0 : i32, i32, i32, i32
  }
  func.func @transform_1(%arg0: i32, %arg1: i32) -> (i32, i32, i32) {
    %c0_i32 = arith.constant 0 : i32
    %c0_i32_0 = arith.constant 0 : i32
    %c0_i32_1 = arith.constant 0 : i32
    return %arg0, %c0_i32, %c0_i32_0 : i32, i32, i32
  }
  func.func @transform_2(%arg0: i32, %arg1: i32) -> (i32, i32, i32) {
    %c0_i32 = arith.constant 0 : i32
    %c0_i32_0 = arith.constant 0 : i32
    %c0_i32_1 = arith.constant 0 : i32
    return %arg0, %c0_i32, %c0_i32_0 : i32, i32, i32
  }
  func.func @transform_3(%arg0: i32, %arg1: i32) -> (i32, i32, i32) {
    %c0_i32 = arith.constant 0 : i32
    %c0_i32_0 = arith.constant 0 : i32
    %c0_i32_1 = arith.constant 0 : i32
    return %arg1, %c0_i32, %c0_i32_0 : i32, i32, i32
  }
  func.func @transform_4(%arg0: i32, %arg1: i32) -> (i32, i32) {
    %c0_i32 = arith.constant 0 : i32
    %c0_i32_0 = arith.constant 0 : i32
    %c0_i32_1 = arith.constant 0 : i32
    return %c0_i32, %c0_i32_0 : i32, i32
  }
  func.func @transform_5(%arg0: i32, %arg1: i32) -> (i32, i32, i32) {
    %c0_i32 = arith.constant 0 : i32
    %c0_i32_0 = arith.constant 0 : i32
    %c0_i32_1 = arith.constant 0 : i32
    return %arg0, %c0_i32, %c0_i32_0 : i32, i32, i32
  }
}

</mosaic_0001>

<bundles_post_ra>
// kernel: tpu_custom_call.1
= control target key start
LH: loop header
LB: loop body
LE: loop exit
PB: predicated region body
PF: predicated region fallthrough
CT: control target
= control target key end

     0   :  { %s1850_s20 = smov 0   ;;  %s1852_s21 = smov 0   ;;  %s2434_s0 = inlined_call_operand.vmem [shape: f32[2,16,18,18], index: 0, kind: input, shape index: {}]   ;;  %s2435_s1 = inlined_call_operand.vmem [shape: f32[2,1,18], index: 1, kind: input, shape index: {}]   ;;  %s2436_s2 = inlined_call_operand.vmem [shape: f32[2,18,1], index: 2, kind: input, shape index: {}]   ;;  %s2437_s3 = inlined_call_operand.vmem [shape: f32[2,8,1], index: 3, kind: input, shape index: {}]   ;;  %s2438_s4 = inlined_call_operand.<no memory space> [shape: f32[1,1], index: 4, kind: input, shape index: {}]   ;;  %s2439_s5 = inlined_call_operand.vmem [shape: f32[2,18,18], index: 5, kind: output, shape index: {}]  }
   0x1   :  { %v10_v0 = vstv %s2438_s4  ;;  %s1854_s22 = smov 0   ;;  %s1856_s23 = smov 0  }
   0x2   :  { %11 = vst [vmem:[#allocation3] sm:$0x1] %v10_v0  ;;  %s1858_s24 = smov 0  }
   0x3 LB: > { %s26_s4 = sadd.s32 1, %s1801_s22  ;;  %s29_s25 = sadd.s32 1, %s1805_s23  ;;  %s1809_s24 = sphi %s1858_s24, %s17_s24   ;;  %s1805_s23 = sphi %s1856_s23, %s2500_s23   ;;  %s1801_s22 = sphi %s1854_s22, %s2499_s22   ;;  %s1797_s21 = sphi %s1852_s21, %s2498_s21   ;;  %s1793_s20 = sphi %s1850_s20, %s2497_s20  }
   0x4   : > { %p27_p0 = scmp.ge.s32.totalorder %s26_s4, 2  ;;  %p1683_p1 = scmp.ge.s32.totalorder %s1809_s24, 1 }
   0x5   : > { %p236_p2 = scmp.lt.s32.totalorder %s1809_s24, 5 }
   0x6   : > { %s2502_s4 = smov (%p27_p0, %s26_s4), 0  ;;  %s2504_s25 = smov (!%p27_p0, %s29_s25), %s1805_s23 }
   0x7   : > { %p237_p3 = pnand %p1683_p1, %p236_p2  ;;  %p31_p4 = scmp.ge.s32.totalorder %s2504_s25, 2 }
   0x9   : > { %s2506_s25 = smov (%p31_p4, %s2504_s25), 0  ;;  %240 = sbr.rel (%p237_p3) target bundleno = 1517 (0x5ed), region = 40 }
  0x10   : > { %s1684_s26 = sshll.u32 %s1793_s20, 3  ;;  %p282_p5 = scmp.lt.s32.totalorder %s1797_s21, 1 }
  0x11   : > { %p284_p6 = scmp.lt.s32.totalorder %s1684_s26, 15  ;;  %p300_p7 = scmp.lt.s32.totalorder %s1793_s20, 1 }
  0x12   : > { %s2508_s21 = smov (!%p282_p5, %s1797_s21), 1  ;;  %p1689_p8 = scmp.ne.s32.totalorder %s1793_s20, 0 }
  0x13   : > { %s2510_s26 = smov (!%p284_p6, %s1684_s26), 15  ;;  %s1716_s27 = smul.u32 48, %s2508_s21  ;;  %vm313_vm0 = vcmask (!%p1689_p8), 146432   ;;  %vm316_vm1 = vcmask (!%p1689_p8), 140288   ;;  %v1811_v1 = vmov (!%p1689_p8), 0.0  }
  0x14   : > { %s294_s30 = scalar_lea.vmem %s2435_s1, %s2508_s21  ;;  %s1715_s6 = smul.u32 3, %s2510_s26  ;;  %314 = vst.msk [vmem:[#allocation2] sm:$0xff] (!%p1689_p8), %vm313_vm0, %v1811_v1  ;;  %315 = vst.msk [vmem:[#allocation2 + $0x8] sm:$0xff] (!%p1689_p8), %vm313_vm0, %v1811_v1 }
  0x15   : > { %s1717_s7 = smul.u32 24, %s2508_s21  ;;  %317 = vst.msk [vmem:[#allocation2 + $0x10] sm:$0x3] (!%p1689_p8), %vm316_vm1, %v1811_v1 }
  0x16   : > { %s288_s8 = sadd.s32 %s1716_s27, %s1715_s6  ;;  %312 = sbr.rel (%p1689_p8) target bundleno = 29 (0x1d), region = 44 }
  0x17   : > { %s1685_s9 = sshll.u32 %s288_s8, 3  ;;  %s299_s12 = scalar_lea.vmem %s2436_s2, %s1717_s7 }
  0x18   : > { %s1898_s15 = scalar_lea.vmem %s2434_s0, %s1685_s9  ;;  %s1903_s18 = scalar_lea.vmem %s2439_s5, %s1717_s7 }
  0x19   : > { %s301_s19 = scalar_select %p300_p7, %s1793_s20, 1 }
  0x1b   : > { %s1687_s26 = sshll.u32 %s301_s19, 3 }
  0x1c   : > { %s1909_s27 = scalar_lea.vmem %s2437_s3, %s1687_s26 }
  0x1d PF: > { %v318_v2 = vld [vmem:[%s299_s12] sm:$0xff]  ;;  %v320_v3 = vld [vmem:[%s299_s12 + $0x10] sm:$0x3]  ;;  %v1812_v4 = vmov 0   ;;  %v319_v5 = vld [vmem:[%s299_s12 + $0x8] sm:$0xff]  ;;  %vm395_vm2 = vcmask 146432  }
  0x1e   : > { %1765 = vset.pattern.permute.xlu0 %v1812_v4  ;;  %1766 = vset.pattern.permute.xlu1 %v1812_v4  ;;  %v1690_v6 = vld [vmem:[%s294_s30] ss:$0 sm:$0xff]  ;;  %v347_v14 = vld [vmem:[%s1898_s15 + $0x8] sm:$0xff]  ;;  %v349_v19 = vld [vmem:[%s1898_s15 + $0x18] sm:$0xff]  ;;  %vm402_vm3 = vcmask 140288   ;;  %vm784_vm4 = vcmask 130112  }
  0x1f   : > { %324 = vperm.xlu0 %1765, %v318_v2   ;;  %334 = vperm.xlu1 %1766, %v320_v3   ;;  %v346_v8 = vld [vmem:[%s1898_s15] sm:$0xff]  ;;  %v351_v18 = vld [vmem:[%s1898_s15 + $0x28] sm:$0x3]  ;;  %v353_v26 = vld [vmem:[%s1898_s15 + $0x38] sm:$0xff]  ;;  %vm791_vm5 = vcmask 195712   ;;  %vm891_vm6 = vcmask 1041409  }
  0x20   : > { %v350_v13 = vld [vmem:[%s1898_s15 + $0x20] sm:$0xff]  ;;  %v348_v27 = vld [vmem:[%s1898_s15 + $0x10] sm:$0x3]  ;;  %v355_v32 = vld [vmem:[%s1898_s15 + $0x48] sm:$0xff]  ;;  %vm893_vm7 = vcmask 1042434   ;;  %vm895_vm8 = vcmask 1043459  }
  0x21   : > { %v352_v33 = vld [vmem:[%s1898_s15 + $0x30] sm:$0xff]  ;;  %v357_v38 = vld [vmem:[%s1898_s15 + $0x58] sm:$0x3]  ;;  %v354_v39 = vld [vmem:[%s1898_s15 + $0x40] sm:$0x3]  ;;  %vm897_vm9 = vcmask 1044484  }
  0x22   : > { %v359_v44 = vld [vmem:[%s1898_s15 + $0x68] sm:$0xff]  ;;  %v356_v45 = vld [vmem:[%s1898_s15 + $0x50] sm:$0xff]  ;;  %v361_v50 = vld [vmem:[%s1898_s15 + $0x78] sm:$0xff]  ;;  %vm899_vm10 = vcmask 1045509   ;;  %vm901_vm11 = vcmask 1046534   ;;  %vm903_vm12 = vcmask 1047559  }
  0x23   : > { %329 = vperm.xlu0 %1765, %v319_v5   ;;  %v358_v51 = vld [vmem:[%s1898_s15 + $0x60] sm:$0xff]  ;;  %v363_v56 = vld [vmem:[%s1898_s15 + $0x88] sm:$0x3]  ;;  %v360_v57 = vld [vmem:[%s1898_s15 + $0x70] sm:$0x3]  ;;  %vm1815_vm13 = vmmov 0  }
  0x24   : > { %v365_v62 = vld [vmem:[%s1898_s15 + $0x98] sm:$0xff]  ;;  %v362_v63 = vld [vmem:[%s1898_s15 + $0x80] sm:$0xff]  ;;  %v367_v5 = vld [vmem:[%s1898_s15 + $0xa8] sm:$0xff]  ;;  %vm1414_vm14 = vcmask 64512   ;;  %p1694_p9 = scmp.ne.s32.totalorder %s1793_s20, 1 }
  0x9e   : > { %v325_v7 = vpop.permute.xlu0 %324  ;;  %v335_v10 = vpop.permute.xlu1 %334 }
  0x9f   : > { %v1913_v9 = vmul.f32 %v1690_v6, %v325_v7  ;;  %v1922_v16 = vmul.f32 %v1690_v6, %v335_v10 }
  0xa1   : > { %v1916_v11 = vmul.f32 %v346_v8, %v1913_v9  ;;  %v1944_v24 = vmul.f32 %v351_v18, %v1922_v16  ;;  %v1947_v25 = vmul.f32 %v349_v19, %v1913_v9  ;;  %v1962_v31 = vmul.f32 %v348_v27, %v1922_v16  ;;  %v366_v18 = vld [vmem:[%s1898_s15 + $0xa0] sm:$0x3] }
  0xa2   : > { %v330_v12 = vpop.permute.xlu0 %329  ;;  %v1974_v36 = vmul.f32 %v355_v32, %v1913_v9  ;;  %v1977_v37 = vmul.f32 %v352_v33, %v1913_v9  ;;  %v1989_v42 = vmul.f32 %v357_v38, %v1922_v16  ;;  %v1992_v43 = vmul.f32 %v354_v39, %v1922_v16 }
  0xa3   : > { %v1920_v15 = vmul.f32 %v1690_v6, %v330_v12  ;;  %v1926_v17 = vsel %vm395_vm2, %v1916_v11, 0.0  ;;  %2460 = vst [vmem:[#allocation4_spill] sm:$0xff] %v1944_v24  ;;  %v1954_v28 = vsel %vm402_vm3, %v1944_v24, 0.0  ;;  %v406_v29 = vsel %vm395_vm2, %v1947_v25, 0.0  ;;  %2462 = vst [vmem:[#allocation6_spill] sm:$0xff] %v1962_v31  ;;  %v364_v6 = vld [vmem:[%s1898_s15 + $0x90] sm:$0xff] }
  0xa4   : > { %397 = vadd.xlane.f32.xlu1 %v1926_v17  ;;  %v403_v35 = vsel %vm402_vm3, %v1962_v31, 0.0  ;;  %v1984_v40 = vsel %vm395_vm2, %v1974_v36, 0.0  ;;  %v415_v41 = vsel %vm395_vm2, %v1977_v37, 0.0  ;;  %2463 = vst [vmem:[#allocation7_spill] sm:$0xff] %v1989_v42  ;;  %2464 = vst [vmem:[#allocation8_spill] sm:$0xff] %v1992_v43  ;;  %v1999_v46 = vsel %vm402_vm3, %v1989_v42, 0.0 }
  0xa5   : > { %v1932_v20 = vmul.f32 %v350_v13, %v1920_v15  ;;  %v1935_v21 = vmul.f32 %v347_v14, %v1920_v15  ;;  %v1959_v30 = vmul.f32 %v353_v26, %v1920_v15  ;;  %v421_v47 = vsel %vm402_vm3, %v1992_v43, 0.0 }
  0xa6   : > { %v2004_v48 = vmul.f32 %v359_v44, %v1920_v15  ;;  %v2007_v49 = vmul.f32 %v356_v45, %v1920_v15  ;;  %v2019_v54 = vmul.f32 %v361_v50, %v1913_v9  ;;  %v2022_v55 = vmul.f32 %v358_v51, %v1913_v9 }
  0xa7   : > { %v1939_v22 = vsel %vm395_vm2, %v1932_v20, 0.0  ;;  %v399_v23 = vsel %vm395_vm2, %v1935_v21, 0.0  ;;  %2461 = vst [vmem:[#allocation5_spill] sm:$0xff] %v1959_v30  ;;  %v1969_v34 = vsel %vm395_vm2, %v1959_v30, 0.0  ;;  %v2034_v60 = vmul.f32 %v363_v56, %v1922_v16 }
  0xa8   : > { %410 = vadd.xlane.f32.xlu1 %v1939_v22  ;;  %400 = vadd.xlane.f32.xlu0 %v399_v23  ;;  %2465 = vst [vmem:[#allocation9_spill] sm:$0xff] %v2004_v48  ;;  %2466 = vst [vmem:[#allocation10_spill] sm:$0xff] %v2007_v49  ;;  %v2014_v52 = vsel %vm395_vm2, %v2004_v48, 0.0  ;;  %v427_v53 = vsel %vm395_vm2, %v2007_v49, 0.0  ;;  %v2029_v58 = vsel %vm395_vm2, %v2019_v54, 0.0  ;;  %v433_v59 = vsel %vm395_vm2, %v2022_v55, 0.0 }
  0xa9   : > { %2467 = vst [vmem:[#allocation11_spill] sm:$0xff] %v2019_v54  ;;  %2468 = vst [vmem:[#allocation12_spill] sm:$0xff] %v2022_v55  ;;  %v2037_v61 = vmul.f32 %v360_v57, %v1922_v16  ;;  %v469_v0 = vadd.f32 %v399_v23, %v1926_v17  ;;  %v448_v1 = vsel %vm402_vm3, %v2034_v60, 0.0  ;;  %v2048_v3 = vmul.f32 %v365_v62, %v1920_v15  ;;  %v369_v17 = vld [vmem:[%s1898_s15 + $0xb8] sm:$0x3] }
  0xaa   : > { %2469 = vst [vmem:[#allocation13_spill] sm:$0xff] %v2034_v60  ;;  %v2051_v4 = vmul.f32 %v362_v63, %v1920_v15  ;;  %v477_v7 = vadd.f32 %v1939_v22, %v406_v29  ;;  %v2061_v13 = vmul.f32 %v367_v5, %v1913_v9  ;;  %v2064_v14 = vmul.f32 %v364_v6, %v1913_v9  ;;  %v368_v9 = vld [vmem:[%s1898_s15 + $0xb0] sm:$0xff] }
  0xab   : > { %2470 = vst [vmem:[#allocation14_spill] sm:$0xff] %v2037_v61  ;;  %v439_v2 = vsel %vm402_vm3, %v2037_v61, 0.0  ;;  %2471 = vst [vmem:[#allocation15_spill] sm:$0xff] %v2048_v3  ;;  %v470_v8 = vadd.f32 %v469_v0, %v403_v35  ;;  %v454_v10 = vsel %vm395_vm2, %v2048_v3, 0.0  ;;  %v2074_v27 = vmul.f32 %v369_v17, %v1922_v16 }
  0xac   : > { %413 = vadd.xlane.f32.xlu1 %v1954_v28  ;;  %407 = vadd.xlane.f32.xlu0 %v406_v29  ;;  %2472 = vst [vmem:[#allocation16_spill] sm:$0xff] %v2051_v4  ;;  %v445_v12 = vsel %vm395_vm2, %v2051_v4, 0.0  ;;  %2473 = vst [vmem:[#allocation17_spill] sm:$0xff] %v2061_v13  ;;  %v478_v19 = vadd.f32 %v477_v7, %v1954_v28  ;;  %v460_v23 = vsel %vm395_vm2, %v2061_v13, 0.0  ;;  %v451_v26 = vsel %vm395_vm2, %v2064_v14, 0.0 }
  0xad   : > { %2474 = vst [vmem:[#allocation18_spill] sm:$0xff] %v2064_v14  ;;  %v471_v22 = vrot.slane %v470_v8, 4  ;;  %2475 = vst [vmem:[#allocation19_spill] sm:$0xff] %v2074_v27  ;;  %v2077_v29 = vmul.f32 %v366_v18, %v1922_v16  ;;  %v485_v33 = vadd.f32 %v1969_v34, %v415_v41  ;;  %v2086_v39 = vmul.f32 %v368_v9, %v1920_v15 }
  0xae   : > { %v479_v32 = vrot.slane %v478_v19, 4  ;;  %v501_v15 = vadd.f32 %v2014_v52, %v433_v59  ;;  %v509_v17 = vadd.f32 %v445_v12, %v2029_v58 }
  0xaf   : > { %2476 = vst [vmem:[#allocation20_spill] sm:$0xff] %v2077_v29  ;;  %v472_v28 = vadd.f32 %v471_v22, %v470_v8  ;;  %v457_v38 = vsel %vm402_vm3, %v2077_v29, 0.0  ;;  %2477 = vst [vmem:[#allocation21_spill] sm:$0xff] %v2086_v39  ;;  %v486_v45 = vadd.f32 %v485_v33, %v421_v47  ;;  %v463_v50 = vsel %vm395_vm2, %v2086_v39, 0.0 }
  0xb0   : > { %419 = vadd.xlane.f32.xlu1 %v1969_v34  ;;  %404 = vadd.xlane.f32.xlu0 %v403_v35  ;;  %v466_v35 = vsel %vm402_vm3, %v2074_v27, 0.0  ;;  %v480_v16 = vadd.f32 %v479_v32, %v478_v19  ;;  %v493_v34 = vadd.f32 %v427_v53, %v1984_v40  ;;  %v502_v7 = vadd.f32 %v501_v15, %v439_v2 }
  0xb1   : > { %v473_v44 = vrot.slane %v472_v28, 2  ;;  %v487_v56 = vrot.slane %v486_v45, 4  ;;  %v510_v22 = vadd.f32 %v509_v17, %v448_v1  ;;  %v517_v32 = vadd.f32 %v454_v10, %v451_v26 }
  0xb2   : > { %v494_v57 = vadd.f32 %v493_v34, %v1999_v46 }
  0xb3   : > { %v474_v51 = vadd.f32 %v473_v44, %v472_v28  ;;  %v488_v62 = vadd.f32 %v487_v56, %v486_v45  ;;  %v525_v45 = vadd.f32 %v463_v50, %v460_v23 }
  0xb4   : > { %425 = vadd.xlane.f32.xlu1 %v1984_v40  ;;  %416 = vadd.xlane.f32.xlu0 %v415_v41  ;;  %v481_v41 = vrot.slane %v480_v16, 2  ;;  %v495_v5 = vrot.slane %v494_v57, 4 }
  0xb5   : > { %v475_v63 = vrot.slane %v474_v51, 1  ;;  %v489_v6 = vrot.slane %v488_v62, 2 }
  0xb6   : > { %v482_v0 = vadd.f32 %v481_v41, %v480_v16  ;;  %v496_v40 = vadd.f32 %v495_v5, %v494_v57 }
  0xb7   : > { %v490_v18 = vadd.f32 %v489_v6, %v488_v62 }
  0xb8   : > { %431 = vadd.xlane.f32.xlu1 %v1999_v46  ;;  %422 = vadd.xlane.f32.xlu0 %v421_v47  ;;  %v476_v47 = vadd.f32 %v475_v63, %v474_v51  ;;  %v483_v8 = vrot.slane %v482_v0, 1  ;;  %v497_v46 = vrot.slane %v496_v40, 2 }
  0xba   : > { %v484_v19 = vadd.f32 %v483_v8, %v482_v0  ;;  %v498_v16 = vadd.f32 %v497_v46, %v496_v40 }
  0xbc   : > { %437 = vadd.xlane.f32.xlu1 %v2014_v52  ;;  %428 = vadd.xlane.f32.xlu0 %v427_v53  ;;  %v503_v53 = vrot.slane %v502_v7, 4  ;;  %v491_v52 = vrot.slane %v490_v18, 1  ;;  %v499_v34 = vrot.slane %v498_v16, 1 }
  0xbe   : > { %v504_v9 = vadd.f32 %v503_v53, %v502_v7  ;;  %v492_v28 = vadd.f32 %v491_v52, %v490_v18 }
  0xc0   : > { %443 = vadd.xlane.f32.xlu1 %v2029_v58  ;;  %434 = vadd.xlane.f32.xlu0 %v433_v59  ;;  %v511_v59 = vrot.slane %v510_v22, 4  ;;  %v505_v33 = vrot.slane %v504_v9, 2 }
  0xc2   : > { %v512_v44 = vadd.f32 %v511_v59, %v510_v22  ;;  %v506_v58 = vadd.f32 %v505_v33, %v504_v9 }
  0xc4   : > { %449 = vadd.xlane.f32.xlu1 %v448_v1  ;;  %440 = vadd.xlane.f32.xlu0 %v439_v2  ;;  %v518_v2 = vadd.f32 %v517_v32, %v457_v38  ;;  %v513_v1 = vrot.slane %v512_v44, 2  ;;  %v507_v51 = vrot.slane %v506_v58, 1 }
  0xc6   : > { %v508_v57 = vadd.f32 %v507_v51, %v506_v58  ;;  %v514_v62 = vadd.f32 %v513_v1, %v512_v44 }
  0xc8   : > { %455 = vadd.xlane.f32.xlu1 %v454_v10  ;;  %446 = vadd.xlane.f32.xlu0 %v445_v12  ;;  %v519_v12 = vrot.slane %v518_v2, 4  ;;  %v526_v10 = vadd.f32 %v525_v45, %v466_v35  ;;  %v515_v0 = vrot.slane %v514_v62, 1 }
  0xca   : > { %v520_v41 = vadd.f32 %v519_v12, %v518_v2 }
  0xcc   : > { %461 = vadd.xlane.f32.xlu1 %v460_v23  ;;  %452 = vadd.xlane.f32.xlu0 %v451_v26  ;;  %v500_v26 = vadd.f32 %v499_v34, %v498_v16  ;;  %v521_v56 = vrot.slane %v520_v41, 2 }
  0xce   : > { %v522_v15 = vadd.f32 %v521_v56, %v520_v41 }
  0xd0   : > { %467 = vadd.xlane.f32.xlu1 %v466_v35  ;;  %458 = vadd.xlane.f32.xlu0 %v457_v38  ;;  %v527_v38 = vrot.slane %v526_v10, 4  ;;  %v523_v5 = vrot.slane %v522_v15, 1 }
  0xd2   : > { %v528_v63 = vadd.f32 %v527_v38, %v526_v10  ;;  %v524_v35 = vadd.f32 %v523_v5, %v522_v15 }
  0xd4   : > { %464 = vadd.xlane.f32.xlu0 %v463_v50  ;;  %v529_v23 = vrot.slane %v528_v63, 2  ;;  %v516_v50 = vadd.f32 %v515_v0, %v514_v62 }
  0xd6   : > { %v530_v6 = vadd.f32 %v529_v23, %v528_v63 }
  0xd8   : > { %v531_v7 = vrot.slane %v530_v6, 1 }
  0xe1   : > { %546 = vbcast.lane.b32.xlu1 %v476_v47, 264 }
  0xe5   : > { %553 = vbcast.lane.b32.xlu1 %v484_v19, 256 }
  0xe9   : > { %550 = vbcast.lane.b32.xlu1 %v476_v47, 272 }
  0xea   : > { %542 = vbcast.lane.b32.xlu0 %v476_v47, 256  ;;  %v532_v47 = vadd.f32 %v531_v7, %v530_v6 }
  0xed   : > { %564 = vbcast.lane.b32.xlu1 %v492_v28, 256 }
  0xee   : > { %557 = vbcast.lane.b32.xlu0 %v484_v19, 264 }
  0xf1   : > { %572 = vbcast.lane.b32.xlu1 %v492_v28, 272 }
  0xf2   : > { %561 = vbcast.lane.b32.xlu0 %v484_v19, 272 }
  0xf5   : > { %579 = vbcast.lane.b32.xlu1 %v500_v26, 264 }
  0xf6   : > { %568 = vbcast.lane.b32.xlu0 %v492_v28, 264 }
  0xf9   : > { %586 = vbcast.lane.b32.xlu1 %v508_v57, 256 }
  0xfa   : > { %575 = vbcast.lane.b32.xlu0 %v500_v26, 256 }
  0xfd   : > { %594 = vbcast.lane.b32.xlu1 %v508_v57, 272 }
  0xfe   : > { %583 = vbcast.lane.b32.xlu0 %v500_v26, 272 }
 0x101   : > { %601 = vbcast.lane.b32.xlu1 %v516_v50, 264 }
 0x102   : > { %590 = vbcast.lane.b32.xlu0 %v508_v57, 264 }
 0x105   : > { %608 = vbcast.lane.b32.xlu1 %v524_v35, 256 }
 0x106   : > { %597 = vbcast.lane.b32.xlu0 %v516_v50, 256 }
 0x109   : > { %616 = vbcast.lane.b32.xlu1 %v524_v35, 272 }
 0x10a   : > { %605 = vbcast.lane.b32.xlu0 %v516_v50, 272 }
 0x10d   : > { %623 = vbcast.lane.b32.xlu1 %v532_v47, 264 }
 0x10e   : > { %612 = vbcast.lane.b32.xlu0 %v524_v35, 264 }
 0x112   : > { %619 = vbcast.lane.b32.xlu0 %v532_v47, 256 }
 0x116   : > { %627 = vbcast.lane.b32.xlu0 %v532_v47, 272 }
 0x131   : > { %v398_v8 = vpop.xlane.xlu1 %397 }
 0x135   : > { %v411_v17 = vpop.xlane.xlu1 %410  ;;  %v401_v18 = vpop.xlane.xlu0 %400 }
 0x139   : > { %v414_v40 = vpop.xlane.xlu1 %413  ;;  %v408_v53 = vpop.xlane.xlu0 %407 }
 0x13d   : > { %v420_v19 = vpop.xlane.xlu1 %419  ;;  %v405_v22 = vpop.xlane.xlu0 %404 }
 0x141   : > { %v426_v46 = vpop.xlane.xlu1 %425  ;;  %v417_v9 = vpop.xlane.xlu0 %416 }
 0x145   : > { %v432_v32 = vpop.xlane.xlu1 %431  ;;  %v423_v52 = vpop.xlane.xlu0 %422 }
 0x149   : > { %v438_v59 = vpop.xlane.xlu1 %437  ;;  %v429_v33 = vpop.xlane.xlu0 %428 }
 0x14d   : > { %v444_v2 = vpop.xlane.xlu1 %443  ;;  %v435_v28 = vpop.xlane.xlu0 %434 }
 0x151   : > { %v450_v16 = vpop.xlane.xlu1 %449  ;;  %v441_v44 = vpop.xlane.xlu0 %440 }
 0x155   : > { %v2094_v58 = vpop.xlane.xlu1 %455  ;;  %v447_v12 = vpop.xlane.xlu0 %446 }
 0x159   : > { %v2096_v45 = vpop.xlane.xlu1 %461  ;;  %v453_v34 = vpop.xlane.xlu0 %452 }
 0x15d   : > { %v2098_v1 = vpop.xlane.xlu1 %467  ;;  %v2100_v41 = vpop.xlane.xlu0 %458 }
 0x161   : > { %v2102_v10 = vpop.xlane.xlu0 %464  ;;  %v547_v26 = vpop.permute.xlu1 %546 }
 0x162   : > { %v2104_v51 = vadd.f32 %v547_v26, %v401_v18 }
 0x164   : > { %705 = vperm.xlu0 %1765, %v2104_v51  }
 0x165   : > { %v554_v56 = vpop.permute.xlu1 %553  ;;  %v543_v38 = vpop.permute.xlu0 %542 }
 0x166   : > { %v2107_v57 = vadd.f32 %v543_v38, %v398_v8  ;;  %v2110_v63 = vadd.f32 %v554_v56, %v408_v53 }
 0x168   : > { %702 = vperm.xlu1 %1766, %v2107_v57  }
 0x169   : > { %v551_v62 = vpop.permute.xlu1 %550  ;;  %v558_v15 = vpop.permute.xlu0 %557 }
 0x16a   : > { %v2112_v0 = vadd.f32 %v558_v15, %v411_v17  ;;  %v2116_v5 = vadd.f32 %v551_v62, %v405_v22 }
 0x16c   : > { %711 = vperm.xlu1 %1766, %v2110_v63   ;;  %714 = vperm.xlu0 %1765, %v2112_v0  }
 0x16d   : > { %v565_v23 = vpop.permute.xlu1 %564  ;;  %v562_v50 = vpop.permute.xlu0 %561 }
 0x16e   : > { %v2118_v35 = vadd.f32 %v562_v50, %v414_v40  ;;  %v2122_v47 = vadd.f32 %v565_v23, %v417_v9 }
 0x170   : > { %708 = vperm.xlu1 %1766, %v2116_v5   ;;  %717 = vperm.xlu0 %1765, %v2118_v35  }
 0x171   : > { %v573_v6 = vpop.permute.xlu1 %572  ;;  %v569_v7 = vpop.permute.xlu0 %568 }
 0x172   : > { %v2124_v8 = vadd.f32 %v569_v7, %v420_v19  ;;  %v2128_v53 = vadd.f32 %v573_v6, %v423_v52 }
 0x174   : > { %720 = vperm.xlu1 %1766, %v2122_v47   ;;  %723 = vperm.xlu0 %1765, %v2124_v8  }
 0x175   : > { %v580_v17 = vpop.permute.xlu1 %579  ;;  %v576_v18 = vpop.permute.xlu0 %575 }
 0x176   : > { %v2130_v40 = vadd.f32 %v576_v18, %v426_v46  ;;  %v2134_v9 = vadd.f32 %v580_v17, %v429_v33 }
 0x178   : > { %726 = vperm.xlu1 %1766, %v2128_v53   ;;  %729 = vperm.xlu0 %1765, %v2130_v40  }
 0x179   : > { %v587_v22 = vpop.permute.xlu1 %586  ;;  %v584_v26 = vpop.permute.xlu0 %583 }
 0x17a   : > { %v2136_v19 = vadd.f32 %v584_v26, %v432_v32  ;;  %v2140_v52 = vadd.f32 %v587_v22, %v435_v28 }
 0x17c   : > { %732 = vperm.xlu1 %1766, %v2134_v9   ;;  %735 = vperm.xlu0 %1765, %v2136_v19  }
 0x17d   : > { %v595_v56 = vpop.permute.xlu1 %594  ;;  %v591_v38 = vpop.permute.xlu0 %590 }
 0x17e   : > { %v2142_v46 = vadd.f32 %v591_v38, %v438_v59  ;;  %v2146_v33 = vadd.f32 %v595_v56, %v441_v44 }
 0x180   : > { %738 = vperm.xlu1 %1766, %v2140_v52   ;;  %741 = vperm.xlu0 %1765, %v2142_v46  }
 0x181   : > { %v602_v62 = vpop.permute.xlu1 %601  ;;  %v598_v15 = vpop.permute.xlu0 %597 }
 0x182   : > { %v2148_v32 = vadd.f32 %v598_v15, %v444_v2  ;;  %v2152_v28 = vadd.f32 %v602_v62, %v447_v12 }
 0x184   : > { %744 = vperm.xlu1 %1766, %v2146_v33   ;;  %747 = vperm.xlu0 %1765, %v2148_v32  }
 0x185   : > { %v609_v23 = vpop.permute.xlu1 %608  ;;  %v606_v50 = vpop.permute.xlu0 %605 }
 0x186   : > { %v2154_v59 = vadd.f32 %v606_v50, %v450_v16  ;;  %v2158_v44 = vadd.f32 %v609_v23, %v453_v34 }
 0x188   : > { %750 = vperm.xlu1 %1766, %v2152_v28   ;;  %753 = vperm.xlu0 %1765, %v2154_v59  }
 0x189   : > { %v617_v6 = vpop.permute.xlu1 %616  ;;  %v613_v7 = vpop.permute.xlu0 %612 }
 0x18a   : > { %v2161_v2 = vadd.f32 %v613_v7, %v2094_v58  ;;  %v2166_v12 = vadd.f32 %v617_v6, %v2100_v41  ;;  %v2443_v41 = vmov 0.0   ;;  %v773_v6 = vlaneseq }
 0x18b   : > { %1702 = vmatprep.subr.mxu0 %v2443_v41  ;;  %1713 = vmatprep.subr.mxu1 %v2443_v41 }
 0x18c   : > { %756 = vperm.xlu1 %1766, %v2158_v44   ;;  %759 = vperm.xlu0 %1765, %v2161_v2   ;;  %v2183_v39 = vshrl.u32 %v773_v6, 7 }
 0x18d   : > { %v620_v17 = vpop.permute.xlu0 %619  ;;  %v624_v18 = vpop.permute.xlu1 %623 }
 0x18e   : > { %v2169_v16 = vadd.f32 %v620_v17, %v2096_v45  ;;  %v2174_v58 = vadd.f32 %v624_v18, %v2102_v10  ;;  %v774_v18 = vand.u32 127, %v773_v6 }
 0x190   : > { %762 = vperm.xlu1 %1766, %v2166_v12   ;;  %765 = vperm.xlu0 %1765, %v2169_v16   ;;  %v786_v29 = vadd.s32 4294967280, %v774_v18  ;;  %v779_v41 = vadd.s32 4294967288, %v774_v18  ;;  %v2186_v61 = vsub.s32 %v774_v18, %v2183_v39 }
 0x191   : > { %v628_v34 = vpop.permute.xlu0 %627 }
 0x192   : > { %v2177_v22 = vadd.f32 %v628_v34, %v2098_v1  ;;  %v2189_v13 = vsub.s32 %v786_v29, %v2183_v39  ;;  %v2192_v4 = vsub.s32 %v779_v41, %v2183_v39 }
 0x194   : > { %768 = vperm.xlu1 %1766, %v2174_v58   ;;  %771 = vperm.xlu0 %1765, %v2177_v22  }
 0x1e3   : > { %v706_v45 = vpop.permute.xlu0 %705 }
 0x1e4   : > { %v783_v29 = vrot.slane %v706_v45, %v2192_v4 }
 0x1e7   : > { %v703_v26 = vpop.permute.xlu1 %702 }
 0x1e8   : > { %v778_v48 = vrot.slane %v703_v26, %v2186_v61 }
 0x1eb   : > { %v712_v56 = vpop.permute.xlu1 %711  ;;  %v715_v38 = vpop.permute.xlu0 %714 }
 0x1ec   : > { %v796_v43 = vrot.slane %v712_v56, %v2186_v61  ;;  %v800_v6 = vrot.slane %v715_v38, %v2192_v4 }
 0x1ef   : > { %v709_v62 = vpop.permute.xlu1 %708  ;;  %v718_v15 = vpop.permute.xlu0 %717 }
 0x1f0   : > { %v790_v31 = vrot.slane %v709_v62, %v2189_v13  ;;  %v805_v54 = vrot.slane %v718_v15, %v2189_v13  ;;  %v785_v62 = vsel %vm784_vm4, %v783_v29, %v778_v48 }
 0x1f3   : > { %v721_v10 = vpop.permute.xlu1 %720  ;;  %v724_v23 = vpop.permute.xlu0 %723 }
 0x1f4   : > { %v810_v41 = vrot.slane %v721_v10, %v2186_v61  ;;  %v814_v49 = vrot.slane %v724_v23, %v2192_v4  ;;  %v792_v10 = vsel %vm791_vm5, %v790_v31, %v785_v62 }
 0x1f6   : > { %v815_v30 = vsel %vm784_vm4, %v814_v49, %v810_v41 }
 0x1f7   : > { %v727_v50 = vpop.permute.xlu1 %726  ;;  %v730_v1 = vpop.permute.xlu0 %729 }
 0x1f8   : > { %v819_v26 = vrot.slane %v727_v50, %v2189_v13  ;;  %v824_v56 = vrot.slane %v730_v1, %v2186_v61 }
 0x1fb   : > { %v733_v7 = vpop.permute.xlu1 %732  ;;  %v736_v17 = vpop.permute.xlu0 %735 }
 0x1fc   : > { %v828_v18 = vrot.slane %v733_v7, %v2192_v4  ;;  %v801_v7 = vsel %vm784_vm4, %v800_v6, %v796_v43  ;;  %v833_v45 = vrot.slane %v736_v17, %v2189_v13  ;;  %v820_v17 = vsel %vm791_vm5, %v819_v26, %v815_v30 }
 0x1fd   : > { %v806_v1 = vsel %vm791_vm5, %v805_v54, %v801_v7 }
 0x1fe   : > { %v829_v23 = vsel %vm784_vm4, %v828_v18, %v824_v56 }
 0x1ff   : > { %v739_v34 = vpop.permute.xlu1 %738  ;;  %v742_v27 = vpop.permute.xlu0 %741 }
 0x200   : > { %v838_v55 = vrot.slane %v739_v34, %v2186_v61  ;;  %v842_v50 = vrot.slane %v742_v27, %v2192_v4  ;;  %v834_v27 = vsel %vm791_vm5, %v833_v45, %v829_v23 }
 0x203   : > { %v745_v60 = vpop.permute.xlu1 %744  ;;  %v748_v3 = vpop.permute.xlu0 %747 }
 0x204   : > { %v847_v48 = vrot.slane %v745_v60, %v2189_v13  ;;  %v852_v43 = vrot.slane %v748_v3, %v2186_v61  ;;  %v892_v60 = vsel %vm891_vm6, %v806_v1, %v792_v10  ;;  %v843_v3 = vsel %vm784_vm4, %v842_v50, %v838_v55 }
 0x205   : > { %v894_v30 = vsel %vm893_vm7, %v820_v17, %v892_v60  ;;  %v2243_v17 = vld [vmem:[%s1909_s27] sm:$0xff] }
 0x207   : > { %v751_v42 = vpop.permute.xlu1 %750  ;;  %v754_v14 = vpop.permute.xlu0 %753 }
 0x208   : > { %v856_v15 = vrot.slane %v751_v42, %v2192_v4  ;;  %v861_v42 = vrot.slane %v754_v14, %v2189_v13  ;;  %v848_v14 = vsel %vm791_vm5, %v847_v48, %v843_v3  ;;  %v938_v3 = vsub.s32 5, %v2183_v39 }
 0x20a   : > { %v857_v54 = vsel %vm784_vm4, %v856_v15, %v852_v43 }
 0x20b   : > { %v757_v38 = vpop.permute.xlu1 %756  ;;  %v760_v24 = vpop.permute.xlu0 %759  ;;  %v862_v29 = vsel %vm791_vm5, %v861_v42, %v857_v54  ;;  %v909_v42 = vmul.f32 0.5, %v2243_v17 }
 0x20c   : > { %v866_v31 = vrot.slane %v757_v38, %v2186_v61  ;;  %v870_v6 = vrot.slane %v760_v24, %v2192_v4  ;;  %v896_v24 = vsel %vm895_vm8, %v834_v27, %v894_v30  ;;  %v934_v27 = vsub.s32 4, %v2183_v39 }
 0x20d   : > { %v898_v45 = vsel %vm897_vm9, %v848_v14, %v896_v24 }
 0x20e   : > { %v871_v41 = vsel %vm784_vm4, %v870_v6, %v866_v31  ;;  %v900_v10 = vsel %vm899_vm10, %v862_v29, %v898_v45  ;;  %v922_v29 = vsub.s32 1, %v2183_v39 }
 0x20f   : > { %v763_v18 = vpop.permute.xlu1 %762  ;;  %v766_v34 = vpop.permute.xlu0 %765 }
 0x210   : > { %v875_v49 = vrot.slane %v763_v18, %v2189_v13  ;;  %v880_v62 = vrot.slane %v766_v34, %v2186_v61  ;;  %v926_v18 = vsub.s32 2, %v2183_v39  ;;  %v2248_v34 = vsub.s32 0, %v2183_v39 }
 0x212   : > { %v876_v38 = vsel %vm791_vm5, %v875_v49, %v871_v41 }
 0x213   : > { %v769_v26 = vpop.permute.xlu1 %768  ;;  %v772_v56 = vpop.permute.xlu0 %771  ;;  %v902_v50 = vsel %vm901_vm11, %v876_v38, %v900_v10  ;;  %v946_v10 = vsub.s32 7, %v2183_v39 }
 0x214   : > { %v884_v55 = vrot.slane %v769_v26, %v2192_v4  ;;  %v889_v7 = vrot.slane %v772_v56, %v2189_v13 }
 0x216   : > { %v885_v15 = vsel %vm784_vm4, %v884_v55, %v880_v62  ;;  %v1814_v62 = vmov 1966171168  }
 0x217   : > { %v890_v23 = vsel %vm791_vm5, %v889_v7, %v885_v15  ;;  %v942_v7 = vsub.s32 6, %v2183_v39 }
 0x218   : > { %v904_v1 = vsel %vm903_vm12, %v890_v23, %v902_v50 }
 0x219   : > { %1703 = vmatpush3.msra.mxu0 %v904_v1  ;;  %1714 = vmatpush3.msra.mxu1 %v904_v1  ;;  %v906_v48 = vsel %vm395_vm2, %v904_v1, 0.0 }
 0x21a   : > { %907 = vadd.xlane.f32.xlu1 %v906_v48 }
 0x2a7   : > { %v908_v43 = vpop.xlane.xlu1 %907 }
 0x2a8   : > { %1768 = vrcp.f32 %v908_v43 }
 0x2b2   : > { %v1769_v31 = vpop.eup %1768 }
 0x2b3   : > { %v911_v6 = vmul.f32 %v1769_v31, %v909_v42 }
 0x2b5   : > { %914 = vperm.xlu0 %1765, %v911_v6  }
 0x334   : > { %v915_v54 = vpop.permute.xlu0 %914 }
 0x335   : > { %v927_v49 = vrot.slane %v915_v54, %v926_v18  ;;  %v919_v60 = vrot.slane %v915_v54, %v2248_v34  ;;  %v2255_v24 = vrot.slane %v915_v54, %v934_v27  ;;  %v2261_v56 = vrot.slane %v915_v54, %v938_v3 }
 0x336   : > { %v923_v38 = vrot.slane %v915_v54, %v922_v29  ;;  %v2270_v15 = vrot.slane %v915_v54, %v942_v7  ;;  %v947_v50 = vrot.slane %v915_v54, %v946_v10 }
 0x337   : > { %v964_v30 = vmul.f32 %v927_v49, %v2128_v53  ;;  %v956_v14 = vmul.f32 %v919_v60, %v2107_v57  ;;  %v969_v41 = vmul.f32 %v2255_v24, %v2142_v46  ;;  %v957_v26 = vmul.f32 %v919_v60, %v2104_v51 }
 0x338   : > { %v986_v53 = vunpack.c.l.s4 %v1814_v62  ;;  %v971_v57 = vmul.f32 %v2261_v56, %v2148_v32  ;;  %v959_v55 = vmul.f32 %v923_v38, %v2110_v63  ;;  %v973_v51 = vmul.f32 %v2261_v56, %v2154_v59 }
 0x339   : > { %1215 = vperm.xlu1 %1766, %v964_v30   ;;  %1191 = vperm.xlu0 %1765, %v956_v14   ;;  %v960_v46 = vmul.f32 %v923_v38, %v2112_v0  ;;  %v975_v63 = vmul.f32 %v2270_v15, %v2161_v2  ;;  %v958_v23 = vmul.f32 %v919_v60, %v2116_v5  ;;  %v930_v2 = vsub.s32 3, %v2183_v39 }
 0x33a   : > { %v987_v45 = vunpack.c.0.s8 %v986_v53  ;;  %v977_v0 = vmul.f32 %v947_v50, %v2169_v16  ;;  %v961_v1 = vmul.f32 %v923_v38, %v2118_v35  ;;  %v979_v42 = vmul.f32 %v947_v50, %v2177_v22 }
 0x33b   : > { %v962_v31 = vmul.f32 %v927_v49, %v2122_v47  ;;  %v963_v18 = vmul.f32 %v927_v49, %v2124_v8  ;;  %v931_v16 = vrot.slane %v915_v54, %v930_v2  ;;  %v984_v35 = vcombine.high %v2243_v17, %v2243_v17 }
 0x33c   : > { %v990_v32 = vsub.s32 %v987_v45, %v2183_v39  ;;  %v968_v29 = vmul.f32 %v2255_v24, %v2140_v52  ;;  %v972_v62 = vmul.f32 %v2261_v56, %v2152_v28  ;;  %v974_v53 = vmul.f32 %v2270_v15, %v2158_v44 }
 0x33d   : > { %1230 = vperm.xlu1 %1766, %v969_v41   ;;  %1194 = vperm.xlu0 %1765, %v957_v26   ;;  %v965_v47 = vmul.f32 %v931_v16, %v2130_v40  ;;  %v966_v30 = vmul.f32 %v931_v16, %v2134_v9  ;;  %v967_v49 = vmul.f32 %v931_v16, %v2136_v19 }
 0x33e   : > { %v991_v59 = vrot.slane %v2243_v17, %v990_v32  ;;  %v998_v3 = vrot.slane %v984_v35, %v990_v32  ;;  %v970_v26 = vmul.f32 %v2255_v24, %v2146_v33  ;;  %v976_v33 = vmul.f32 %v2270_v15, %v2166_v12 }
 0x33f   : > { %v978_v24 = vmul.f32 %v947_v50, %v2174_v58 }
 0x340   : > { %v1007_v48 = vrot.slane %v991_v59, %v990_v32  ;;  %v999_v43 = vcombine.high %v991_v59, %v991_v59  ;;  %v1014_v17 = vrot.slane %v998_v3, %v990_v32  ;;  %v1000_v54 = vcombine.high %v998_v3, %v998_v3 }
 0x341   : > { %1236 = vperm.xlu1 %1766, %v971_v57   ;;  %1200 = vperm.xlu0 %1765, %v959_v55   ;;  %v2478_v57 = vmov 0.0  }
 0x342   : > { %v1036_v5 = vrot.slane %v1007_v48, %v2248_v34  ;;  %v1021_v6 = vrot.slane %v999_v43, %v990_v32  ;;  %v1029_v22 = vcombine.high %v1007_v48, %v1007_v48  ;;  %v1052_v40 = vrot.slane %v1014_v17, %v2248_v34  ;;  %1704 = vmatprep.mubr.msk.f32.mxu0 %vm1815_vm13, %v2478_v57 }
 0x343   : > { %v1028_v14 = vrot.slane %v1000_v54, %v990_v32  ;;  %v1030_v41 = vcombine.high %v1014_v17, %v1014_v17  ;;  %1707 = vmatprep.mubr.msk.f32.mxu1 %vm1815_vm13, %v2478_v57 }
 0x344   : > { %v1040_v27 = vrot.slane %v1021_v6, %v2248_v34  ;;  %v1044_v39 = vrot.slane %v1029_v22, %v2248_v34  ;;  %v1031_v60 = vcombine.high %v1021_v6, %v1021_v6 }
 0x345   : > { %1242 = vperm.xlu1 %1766, %v973_v51   ;;  %1203 = vperm.xlu0 %1765, %v960_v46   ;;  %v1056_v9 = vrot.slane %v1028_v14, %v2248_v34  ;;  %v1060_v19 = vrot.slane %v1030_v41, %v2248_v34  ;;  %v1032_v38 = vcombine.high %v1028_v14, %v1028_v14 }
 0x346   : > { %v1048_v8 = vrot.slane %v1031_v60, %v2248_v34 }
 0x347   : > { %v1064_v52 = vrot.slane %v1032_v38, %v2248_v34 }
 0x349   : > { %1248 = vperm.xlu1 %1766, %v975_v63   ;;  %1197 = vperm.xlu0 %1765, %v958_v23  }
 0x34d   : > { %1254 = vperm.xlu1 %1766, %v977_v0   ;;  %1206 = vperm.xlu0 %1765, %v961_v1  }
 0x351   : > { %1260 = vperm.xlu1 %1766, %v979_v42   ;;  %1209 = vperm.xlu0 %1765, %v962_v31  }
 0x355   : > { %1066 = vperm.xlu1 %1766, %v1036_v5   ;;  %1212 = vperm.xlu0 %1765, %v963_v18  }
 0x359   : > { %1070 = vperm.xlu1 %1766, %v1040_v27   ;;  %1218 = vperm.xlu0 %1765, %v965_v47  }
 0x35d   : > { %1074 = vperm.xlu1 %1766, %v1044_v39   ;;  %1221 = vperm.xlu0 %1765, %v966_v30  }
 0x361   : > { %1078 = vperm.xlu1 %1766, %v1048_v8   ;;  %1224 = vperm.xlu0 %1765, %v967_v49  }
 0x365   : > { %1082 = vperm.xlu1 %1766, %v1052_v40   ;;  %1227 = vperm.xlu0 %1765, %v968_v29  }
 0x369   : > { %1086 = vperm.xlu1 %1766, %v1056_v9   ;;  %1233 = vperm.xlu0 %1765, %v970_v26  }
 0x36d   : > { %1090 = vperm.xlu1 %1766, %v1060_v19   ;;  %1239 = vperm.xlu0 %1765, %v972_v62  }
 0x371   : > { %1094 = vperm.xlu1 %1766, %v1064_v52   ;;  %1245 = vperm.xlu0 %1765, %v974_v53  }
 0x375   : > { %1251 = vperm.xlu0 %1765, %v976_v33  }
 0x379   : > { %1257 = vperm.xlu0 %1765, %v978_v24  }
 0x3b8   : > { %v1192_v28 = vpop.permute.xlu0 %1191  ;;  %v1216_v51 = vpop.permute.xlu1 %1215 }
 0x3b9   : > { %v1302_v48 = vrot.slane %v1216_v51, %v2189_v13  ;;  %v1265_v42 = vrot.slane %v1192_v28, %v2186_v61 }
 0x3bc   : > { %v1195_v34 = vpop.permute.xlu0 %1194  ;;  %v1231_v15 = vpop.permute.xlu1 %1230 }
 0x3bd   : > { %v1269_v31 = vrot.slane %v1195_v34, %v2192_v4  ;;  %v1325_v18 = vrot.slane %v1231_v15, %v2192_v4 }
 0x3bf   : > { %v1270_v49 = vsel %vm784_vm4, %v1269_v31, %v1265_v42 }
 0x3c0   : > { %v1201_v56 = vpop.permute.xlu0 %1200  ;;  %v1237_v10 = vpop.permute.xlu1 %1236 }
 0x3c1   : > { %v1279_v16 = vrot.slane %v1201_v56, %v2186_v61  ;;  %v1335_v30 = vrot.slane %v1237_v10, %v2186_v61 }
 0x3c4   : > { %v1204_v44 = vpop.permute.xlu0 %1203  ;;  %v1243_v23 = vpop.permute.xlu1 %1242 }
 0x3c5   : > { %v1283_v43 = vrot.slane %v1204_v44, %v2192_v4  ;;  %v1344_v40 = vrot.slane %v1243_v23, %v2189_v13 }
 0x3c7   : > { %v1284_v8 = vsel %vm784_vm4, %v1283_v43, %v1279_v16 }
 0x3c8   : > { %v1198_v55 = vpop.permute.xlu0 %1197  ;;  %v1249_v59 = vpop.permute.xlu1 %1248 }
 0x3c9   : > { %v1274_v47 = vrot.slane %v1198_v55, %v2189_v13  ;;  %v1353_v62 = vrot.slane %v1249_v59, %v2192_v4 }
 0x3cb   : > { %v1275_v52 = vsel %vm791_vm5, %v1274_v47, %v1270_v49 }
 0x3cc   : > { %v1207_v7 = vpop.permute.xlu0 %1206  ;;  %v1255_v35 = vpop.permute.xlu1 %1254 }
 0x3cd   : > { %v1288_v2 = vrot.slane %v1207_v7, %v2189_v13 }
 0x3cf   : > { %v1289_v14 = vsel %vm791_vm5, %v1288_v2, %v1284_v8 }
 0x3d0   : > { %v1210_v45 = vpop.permute.xlu0 %1209  ;;  %v1374_v24 = vsel %vm891_vm6, %v1289_v14, %v1275_v52  ;;  %v1261_v28 = vpop.permute.xlu1 %1260  ;;  %v2485_v14 = vld [vmem:[#allocation8_spill] sm:$0xff]  ;;  %v2487_v52 = vld [vmem:[#allocation18_spill] sm:$0xff] }
 0x3d1   : > { %v1293_v5 = vrot.slane %v1210_v45, %v2186_v61  ;;  %v1363_v45 = vrot.slane %v1255_v35, %v2186_v61  ;;  %v1372_v15 = vrot.slane %v1261_v28, %v2189_v13  ;;  %v2488_v28 = vld [vmem:[#allocation7_spill] sm:$0xff] }
 0x3d4   : > { %v1213_v12 = vpop.permute.xlu0 %1212 }
 0x3d5   : > { %v1297_v1 = vrot.slane %v1213_v12, %v2192_v4 }
 0x3d7   : > { %v1298_v39 = vsel %vm784_vm4, %v1297_v1, %v1293_v5 }
 0x3d8   : > { %v1219_v46 = vpop.permute.xlu0 %1218  ;;  %v1303_v41 = vsel %vm791_vm5, %v1302_v48, %v1298_v39 }
 0x3d9   : > { %v1307_v17 = vrot.slane %v1219_v46, %v2186_v61  ;;  %v1375_v56 = vsel %vm893_vm7, %v1303_v41, %v1374_v24 }
 0x3dc   : > { %v1222_v58 = vpop.permute.xlu0 %1221 }
 0x3dd   : > { %v1311_v27 = vrot.slane %v1222_v58, %v2192_v4 }
 0x3df   : > { %v1312_v26 = vsel %vm784_vm4, %v1311_v27, %v1307_v17 }
 0x3e0   : > { %v1225_v32 = vpop.permute.xlu0 %1224 }
 0x3e1   : > { %v1316_v60 = vrot.slane %v1225_v32, %v2189_v13 }
 0x3e3   : > { %v1317_v53 = vsel %vm791_vm5, %v1316_v60, %v1312_v26 }
 0x3e4   : > { %v1228_v63 = vpop.permute.xlu0 %1227  ;;  %v1376_v51 = vsel %vm895_vm8, %v1317_v53, %v1375_v56 }
 0x3e5   : > { %v1321_v3 = vrot.slane %v1228_v63, %v2186_v61 }
 0x3e7   : > { %v1326_v33 = vsel %vm784_vm4, %v1325_v18, %v1321_v3 }
 0x3e8   : > { %v1234_v50 = vpop.permute.xlu0 %1233 }
 0x3e9   : > { %v1330_v54 = vrot.slane %v1234_v50, %v2189_v13 }
 0x3eb   : > { %v1331_v34 = vsel %vm791_vm5, %v1330_v54, %v1326_v33 }
 0x3ec   : > { %v1240_v0 = vpop.permute.xlu0 %1239  ;;  %v1377_v58 = vsel %vm897_vm9, %v1331_v34, %v1376_v51  ;;  %v2490_v51 = vld [vmem:[#allocation17_spill] sm:$0xff] }
 0x3ed   : > { %v1339_v22 = vrot.slane %v1240_v0, %v2192_v4 }
 0x3ef   : > { %v1340_v19 = vsel %vm784_vm4, %v1339_v22, %v1335_v30  ;;  %v2479_v22 = vld [vmem:[#allocation5_spill] sm:$0xff] }
 0x3f0   : > { %v1246_v6 = vpop.permute.xlu0 %1245  ;;  %v1345_v44 = vsel %vm791_vm5, %v1344_v40, %v1340_v19  ;;  %v2486_v19 = vld [vmem:[#allocation9_spill] sm:$0xff] }
 0x3f1   : > { %v1349_v29 = vrot.slane %v1246_v6, %v2186_v61  ;;  %v1378_v32 = vsel %vm899_vm10, %v1345_v44, %v1377_v58 }
 0x3f3   : > { %v1354_v55 = vsel %vm784_vm4, %v1353_v62, %v1349_v29 }
 0x3f4   : > { %v1252_v9 = vpop.permute.xlu0 %1251 }
 0x3f5   : > { %v1358_v38 = vrot.slane %v1252_v9, %v2189_v13  ;;  %v1067_v13 = vpop.permute.xlu1 %1066 }
 0x3f6   : > { %v1097_v2 = vmul.f32 %v1067_v13, %v1916_v11  ;;  %v1098_v35 = vmul.f32 %v1067_v13, %v1935_v21  ;;  %v2481_v11 = vld [vmem:[#allocation4_spill] sm:$0xff]  ;;  %v2484_v21 = vld [vmem:[#allocation6_spill] sm:$0xff] }
 0x3f7   : > { %v1359_v12 = vsel %vm791_vm5, %v1358_v38, %v1354_v55  ;;  %v1099_v49 = vmul.f32 %v1067_v13, %v2484_v21  ;;  %v2489_v55 = vld [vmem:[#allocation16_spill] sm:$0xff] }
 0x3f8   : > { %v1258_v7 = vpop.permute.xlu0 %1257  ;;  %v1379_v23 = vsel %vm901_vm11, %v1359_v12, %v1378_v32  ;;  %v1121_v27 = vsel %vm395_vm2, %v1097_v2, 0.0  ;;  %v1136_v40 = vsel %vm395_vm2, %v1098_v35, 0.0  ;;  %v2491_v32 = vld [vmem:[#allocation14_spill] sm:$0xff] }
 0x3f9   : > { %v1367_v46 = vrot.slane %v1258_v7, %v2192_v4  ;;  %v1071_v0 = vpop.permute.xlu1 %1070 }
 0x3fa   : > { %v1100_v31 = vmul.f32 %v1071_v0, %v1947_v25  ;;  %v1101_v18 = vmul.f32 %v1071_v0, %v1932_v20  ;;  %v2480_v25 = vld [vmem:[#allocation12_spill] sm:$0xff]  ;;  %v1102_v3 = vmul.f32 %v1071_v0, %v2481_v11  ;;  %v2482_v20 = vld [vmem:[#allocation10_spill] sm:$0xff] }
 0x3fb   : > { %v1368_v10 = vsel %vm784_vm4, %v1367_v46, %v1363_v45  ;;  %v1151_v46 = vsel %vm402_vm3, %v1099_v49, 0.0 }
 0x3fc   : > { %v1373_v63 = vsel %vm791_vm5, %v1372_v15, %v1368_v10  ;;  %v1122_v16 = vsel %vm395_vm2, %v1100_v31, 0.0  ;;  %v1137_v30 = vsel %vm395_vm2, %v1101_v18, 0.0  ;;  %v1152_v24 = vsel %vm402_vm3, %v1102_v3, 0.0  ;;  %v2496_v3 = vld [vmem:[#allocation19_spill] sm:$0xff] }
 0x3fd   : > { %v1380_v61 = vsel %vm903_vm12, %v1373_v63, %v1379_v23  ;;  %v1075_v1 = vpop.permute.xlu1 %1074  ;;  %v1138_v33 = vadd.f32 %v1137_v30, %v1136_v40  ;;  %v980_v30 = vld [vmem:[#allocation2] sm:$0xff] }
 0x3fe   : > { %1382 = vxpose.xlu0.b32.start.end [1/1] (short) (narrow) %v1380_v61, 24  ;;  %v1103_v5 = vmul.f32 %v1075_v1, %v1977_v37  ;;  %v1104_v47 = vmul.f32 %v1075_v1, %v2479_v22  ;;  %v1123_v37 = vadd.f32 %v1122_v16, %v1121_v27  ;;  %v1105_v29 = vmul.f32 %v1075_v1, %v2485_v14  ;;  %v2492_v61 = vld [vmem:[#allocation15_spill] sm:$0xff]  ;;  %v2495_v22 = vld [vmem:[#allocation20_spill] sm:$0xff] }
 0x400   : > { %v1124_v39 = vsel %vm395_vm2, %v1103_v5, 0.0  ;;  %v1139_v26 = vsel %vm395_vm2, %v1104_v47, 0.0  ;;  %v1154_v58 = vsel %vm402_vm3, %v1105_v29, 0.0  ;;  %v2494_v5 = vld [vmem:[#allocation21_spill] sm:$0xff] }
 0x401   : > { %v1079_v48 = vpop.permute.xlu1 %1078  ;;  %v1125_v9 = vadd.f32 %v1124_v39, %v1123_v37  ;;  %v1140_v15 = vadd.f32 %v1139_v26, %v1138_v33  ;;  %v981_v29 = vld [vmem:[#allocation2 + $0x8] sm:$0xff] }
 0x402   : > { %v1107_v8 = vmul.f32 %v1079_v48, %v2482_v20  ;;  %v1108_v34 = vmul.f32 %v1079_v48, %v2488_v28 }
 0x404   : > { %v1141_v44 = vsel %vm395_vm2, %v1107_v8, 0.0  ;;  %v1156_v0 = vsel %vm402_vm3, %v1108_v34, 0.0 }
 0x405   : > { %v1083_v43 = vpop.permute.xlu1 %1082  ;;  %v1142_v13 = vadd.f32 %v1141_v44, %v1140_v15  ;;  %v1816_v44 = vmov (!%p1694_p9), 0  }
 0x406   : > { %v1109_v60 = vmul.f32 %v1083_v43, %v2480_v25  ;;  %v1110_v38 = vmul.f32 %v1083_v43, %v2486_v19  ;;  %v1111_v63 = vmul.f32 %v1083_v43, %v2491_v32 }
 0x408   : > { %v1128_v62 = vsel %vm395_vm2, %v1109_v60, 0.0  ;;  %v1143_v23 = vsel %vm395_vm2, %v1110_v38, 0.0  ;;  %v1158_v27 = vsel %vm402_vm3, %v1111_v63, 0.0 }
 0x409   : > { %v1087_v42 = vpop.permute.xlu1 %1086 }
 0x40a   : > { %v1113_v7 = vmul.f32 %v1087_v42, %v2489_v55 }
 0x40c   : > { %v1145_v2 = vsel %vm395_vm2, %v1113_v7, 0.0 }
 0x40d   : > { %v1091_v6 = vpop.permute.xlu1 %1090 }
 0x40e   : > { %v1115_v53 = vmul.f32 %v1091_v6, %v2487_v52  ;;  %v1117_v47 = vmul.f32 %v1091_v6, %v2495_v22 }
 0x410   : > { %v1162_v49 = vsel %vm402_vm3, %v1117_v47, 0.0 }
 0x411   : > { %v1095_v41 = vpop.permute.xlu1 %1094 }
 0x412   : > { %v1118_v12 = vmul.f32 %v1095_v41, %v2490_v51  ;;  %v1119_v18 = vmul.f32 %v1095_v41, %v2494_v5  ;;  %v1120_v37 = vmul.f32 %v1095_v41, %v2496_v3 }
 0x414   : > { %v1134_v16 = vsel %vm395_vm2, %v1118_v12, 0.0  ;;  %v1149_v8 = vsel %vm395_vm2, %v1119_v18, 0.0  ;;  %v1164_v26 = vsel %vm402_vm3, %v1120_v37, 0.0 }
 0x427   : > { %1770 = vset.pattern.permute.xlu0 (!%p1694_p9), %v1816_v44 }
 0x47e   : > { %v1398_v50 = vpop.trf.xlu0 }
 0x47f   : > { %1705 = vmatmul.mubr.msk.f32.vlgmr.msra.gmra.mrb[0].mxu0 %vm1414_vm14, %v1398_v50  ;;  %v1116_v50 = vmul.f32 %v1091_v6, %v2492_v61 }
 0x481   : > { %v1147_v39 = vsel %vm395_vm2, %v1116_v50, 0.0 }
 0x482   : > { %v1399_v59 = vpop.trf.xlu0 }
 0x483   : > { %1708 = vmatmul.mubr.msk.f32.vlgmr.msra.gmra.mrb[0].mxu1 %vm1414_vm14, %v1399_v59  ;;  %v1132_v59 = vsel %vm395_vm2, %v1115_v53, 0.0  ;;  %v982_v53 = vld [vmem:[#allocation2 + $0x10] sm:$0x3] }
 0x484   : > { %1710 = vmatprep.mubr.msk.f32.mxu1 %vm1815_vm13, %v2478_v57  ;;  %v1106_v57 = vmul.f32 %v1079_v48, %v1974_v36  ;;  %v2483_v36 = vld [vmem:[#allocation11_spill] sm:$0xff]  ;;  %v2493_v48 = vld [vmem:[#allocation13_spill] sm:$0xff] }
 0x485   : > { %v1112_v54 = vmul.f32 %v1087_v42, %v2483_v36  ;;  %v1114_v31 = vmul.f32 %v1087_v42, %v2493_v48 }
 0x486   : > { %v1400_v4 = vpop.trf.xlu0  ;;  %v1126_v17 = vsel %vm395_vm2, %v1106_v57, 0.0  ;;  %v1144_v57 = vadd.f32 %v1143_v23, %v1142_v13 }
 0x487   : > { %1711 = vmatmul.mubr.msk.f32.gmra.mrb[2].mxu1 %vm1414_vm14, %v1400_v4  ;;  %v1127_v56 = vadd.f32 %v1126_v17, %v1125_v9  ;;  %v1130_v45 = vsel %vm395_vm2, %v1112_v54, 0.0  ;;  %v1153_v4 = vadd.f32 %v1152_v24, %v1151_v46  ;;  %v1160_v42 = vsel %vm402_vm3, %v1114_v31, 0.0 }
 0x488   : > { %v1146_v11 = vadd.f32 %v1145_v2, %v1144_v57 }
 0x489   : > { %v1129_v10 = vadd.f32 %v1128_v62, %v1127_v56  ;;  %v1155_v43 = vadd.f32 %v1154_v58, %v1153_v4  ;;  %v1695_v56 = vld [vmem:[#allocation3] ss:$0 sm:$0xff] (!%p1694_p9) }
 0x48a   : > { %v1148_v21 = vadd.f32 %v1147_v39, %v1146_v11  ;;  %1562 = vperm.xlu0 (!%p1694_p9), %1770, %v1695_v56  }
 0x48b   : > { %v1131_v1 = vadd.f32 %v1130_v45, %v1129_v10  ;;  %v1157_v25 = vadd.f32 %v1156_v0, %v1155_v43 }
 0x48c   : > { %v1150_v40 = vadd.f32 %v1149_v8, %v1148_v21 }
 0x48d   : > { %v1133_v35 = vadd.f32 %v1132_v59, %v1131_v1  ;;  %v1159_v17 = vadd.f32 %v1158_v27, %v1157_v25 }
 0x48f   : > { %v1135_v60 = vadd.f32 %v1134_v16, %v1133_v35  ;;  %v1161_v14 = vadd.f32 %v1160_v42, %v1159_v17 }
 0x491   : > { %v1163_v38 = vadd.f32 %v1162_v49, %v1161_v14 }
 0x493   : > { %v1165_v52 = vadd.f32 %v1164_v26, %v1163_v38 }
 0x509   : > { %v1563_v51 = vpop.permute.xlu0 (!%p1694_p9), %1562 }
 0x552   : > { %v1490_v20 = vpop.f32.mrb[0].mxu0 }
 0x553   : > { %v1504_v36 = vsub.f32 %v1135_v60, %v1490_v20  ;;  %v1706_v54 = vpop.f32.mrb[1].mxu0 }
 0x555   : > { %v1507_v6 = vadd.f32 %v1504_v36, %v980_v30 }
 0x556   : > { %v1495_v9 = vpop.f32.mrb[0].mxu1 }
 0x557   : > { %1510 = vst.msk [vmem:[#allocation2] sm:$0xff] %vm395_vm2, %v1507_v6  ;;  %v1505_v41 = vsub.f32 %v1150_v40, %v1495_v9  ;;  %v1709_v19 = vpop.f32.mrb[1].mxu1 }
 0x559   : > { %v1508_v62 = vadd.f32 %v1505_v41, %v981_v29  ;;  %1516 = sbr.rel (%p1694_p9) target bundleno = 1517 (0x5ed), region = 48 }
 0x55a   : > { %v1500_v33 = vpop.f32.mrb[2].mxu1 }
 0x55b   : > { %1511 = vst.msk [vmem:[#allocation2 + $0x8] sm:$0xff] %vm395_vm2, %v1508_v62  ;;  %v1506_v24 = vsub.f32 %v1165_v52, %v1500_v33  ;;  %v1712_v28 = vpop.f32.mrb[3].mxu1 }
 0x55d   : > { %v1509_v34 = vadd.f32 %v1506_v24, %v982_v53 }
 0x55e   : > { %v1517_v55 = vld [vmem:[#allocation2] sm:$0xff] (!%p1694_p9) }
 0x55f   : > { %1512 = vst.msk [vmem:[#allocation2 + $0x10] sm:$0x3] %vm402_vm3, %v1509_v34  ;;  %1520 = vxpose.xlu0.b32.start [1/3] (short) (narrow) (!%p1694_p9), %v1517_v55, 24 }
 0x562   : > { %v1518_v7 = vld [vmem:[#allocation2 + $0x8] sm:$0xff] }
 0x563   : > { %1521 = vxpose.xlu0.b32.cont [2/3] (short) (narrow) %v1518_v7, 24 }
 0x566   : > { %v1519_v45 = vld [vmem:[#allocation2 + $0x10] sm:$0x3] }
 0x567   : > { %1522 = vxpose.xlu0.b32.end [3/3] (short) (narrow) %v1519_v45, 24 }
 0x5df   : > { %v1536_v12 = vpop.trf.xlu0 }
 0x5e0   : > { %v1552_v46 = vadd.f32 %v1536_v12, %v1517_v55 }
 0x5e2   : > { %v1565_v15 = vadd.f32 %v1563_v51, %v1552_v46 }
 0x5e3   : > { %v1537_v58 = vpop.trf.xlu0 }
 0x5e4   : > { %1568 = vst.msk [vmem:[%s1903_s18] sm:$0xff] %vm395_vm2, %v1565_v15  ;;  %v1553_v10 = vadd.f32 %v1537_v58, %v1518_v7 }
 0x5e6   : > { %v1566_v32 = vadd.f32 %v1563_v51, %v1553_v10 }
 0x5e7   : > { %v1538_v63 = vpop.trf.xlu0 }
 0x5e8   : > { %1569 = vst.msk [vmem:[%s1903_s18 + $0x8] sm:$0xff] %vm395_vm2, %v1566_v32  ;;  %v1554_v23 = vadd.f32 %v1538_v63, %v1519_v45 }
 0x5ea   : > { %v1567_v61 = vadd.f32 %v1563_v51, %v1554_v23 }
 0x5ec   : > { %1570 = vst.msk [vmem:[%s1903_s18 + $0x10] sm:$0x3] %vm402_vm3, %v1567_v61 }
 0x5ed PF: > { %s17_s24 = sadd.s32 1, %s1809_s24   ;;  %s2497_s20 = smov %s1801_s22 }
 0x5ee   : > { %p14_p10 = scmp.ge.s32.totalorder %s17_s24, 6   ;;  %s2498_s21 = smov %s1805_s23 }
 0x5ef   : > { %s2499_s22 = smov %s2502_s4  ;;  %s2500_s23 = smov %s2506_s25 }
 0x5f0   :  { %16 = sbr.rel (!%p14_p10) target bundleno = 3 (0x3), region = 87 }

</bundles_post_ra>
